<compile_context>
chip_gen: v7x
topology: tpu7x:2x2x1
jax: 0.10.0
libtpu: 0.0.40
codegen_flags: <defaults>
</compile_context>

<pallas_src>
import functools

import jax
import jax.numpy as jnp
from jax.experimental import pallas as pl
from jax.experimental.pallas import tpu as pltpu

BN_EPS = 1e-5
LANE = 128
SUBLANE = 8
MAX_BATCH_TILE = 2048  # per-step footprint ~a few MiB << 32 MiB scoped-VMEM default


def _round_up(x, m):
    return (x + m - 1) // m * m


# ----------------------------------------------------------------------------- kernel

def _make_kernel(layer_widths, compute_dtype):
    """Fused MLP kernel.  `layer_widths` = lane-padded output width of each Linear
    after BN folding (all multiples of 128)."""
    num_layers = len(layer_widths)

    def kernel(x_ref, *refs):
        # refs = [W_0 .. W_{L-1}, bias_pack, out]
        w_refs = refs[:num_layers]
        b_pack_ref = refs[num_layers]
        out_ref = refs[num_layers + 1]

        h = x_ref[...].astype(compute_dtype)              # cast once; bf16 live acts
        for l in range(num_layers):
            w = w_refs[l][...]                            # bf16 weights, resident
            b = b_pack_ref[l:l + 1, :layer_widths[l]]     # (1, width) f32, lane-dense
            z = jnp.dot(h, w, preferred_element_type=jnp.float32) + b
            if l < num_layers - 1:
                # ReLU in f32 (safe on v5e's no-bf16 VPU), then back to bf16.
                # BatchNorm is folded into the NEXT layer's W/b; Dropout = identity
                # in eval mode.
                h = jnp.maximum(z, 0.0).astype(compute_dtype)
            else:
                out_ref[...] = z.astype(out_ref.dtype)    # lane-dense bf16 store

    return kernel


# ----------------------------------------------------------------------------- params

def init_raw_params(key, input_size, hidden_sizes, num_classes):
    """PyTorch-equivalent fresh-module parameters (eval-mode running stats).

    Linear: U(-1/sqrt(fan_in), 1/sqrt(fan_in)); weights stored (in, out).
    BatchNorm1d: gamma=1, beta=0, running_mean=0, running_var=1.
    """
    hidden = []
    dims = [input_size] + list(hidden_sizes)
    for i in range(len(hidden_sizes)):
        fan_in, fan_out = dims[i], dims[i + 1]
        key, kw, kb = jax.random.split(key, 3)
        bound = 1.0 / jnp.sqrt(jnp.float32(fan_in))
        w = jax.random.uniform(kw, (fan_in, fan_out), jnp.float32, -bound, bound)
        b = jax.random.uniform(kb, (fan_out,), jnp.float32, -bound, bound)
        gamma = jnp.ones((fan_out,), jnp.float32)
        beta = jnp.zeros((fan_out,), jnp.float32)
        mean = jnp.zeros((fan_out,), jnp.float32)
        var = jnp.ones((fan_out,), jnp.float32)
        hidden.append((w, b, gamma, beta, mean, var))
    fan_in = hidden_sizes[-1]
    key, kw, kb = jax.random.split(key, 3)
    bound = 1.0 / jnp.sqrt(jnp.float32(fan_in))
    w_out = jax.random.uniform(kw, (fan_in, num_classes), jnp.float32, -bound, bound)
    b_out = jax.random.uniform(kb, (num_classes,), jnp.float32, -bound, bound)
    return hidden, (w_out, b_out)


def prepare_params(hidden, final, num_classes, compute_dtype=jnp.bfloat16):
    """Fold eval-mode BN (which follows ReLU) into the NEXT Linear (exact, in f32),
    zero-pad every layer's output width (and the next layer's input rows) to a
    multiple of 128 lanes, cast weights to `compute_dtype`, and pack all biases
    into one (num_layers, max_width) f32 array."""
    weights, biases, widths = [], [], []
    pending = None  # (a, c): eval BN of the previous block, in ACTUAL (unpadded) width
    in_pad = None   # lane-padded input width expected by the current layer
    for (w, b, gamma, beta, mean, var) in hidden:
        w = w.astype(jnp.float32)
        b = b.astype(jnp.float32)
        if pending is not None:
            a, c = pending
            b = c @ w + b            # bias fold uses the ORIGINAL weight
            w = a[:, None] * w       # then scale input rows
        # This block's BN (eval affine) becomes pending for the next Linear.
        a = gamma / jnp.sqrt(var + BN_EPS)
        c = beta - mean * a
        pending = (a, c)
        in_act, out_act = w.shape
        out_pad = _round_up(out_act, LANE)
        row_pad = (in_pad - in_act) if in_pad is not None else 0
        w = jnp.pad(w, ((0, row_pad), (0, out_pad - out_act)))
        b = jnp.pad(b, (0, out_pad - out_act))
        weights.append(w)
        biases.append(b)
        widths.append(out_pad)
        in_pad = out_pad

    # Final Linear: fold last block's BN, then zero-pad to a lane-dense 128 head.
    w_out, b_out = final
    w_out = w_out.astype(jnp.float32)
    b_out = b_out.astype(jnp.float32)
    a, c = pending
    b_f = c @ w_out + b_out
    w_f = a[:, None] * w_out
    in_act, out_act = w_f.shape
    out_pad = _round_up(out_act, LANE)
    w_f = jnp.pad(w_f, ((0, in_pad - in_act), (0, out_pad - out_act)))
    b_f = jnp.pad(b_f, (0, out_pad - out_act))
    weights.append(w_f)
    biases.append(b_f)
    widths.append(out_pad)

    weights = [w.astype(compute_dtype) for w in weights]        # bf16 MXU operands
    max_w = max(widths)
    bias_pack = jnp.stack([jnp.pad(b, (0, max_w - b.shape[0])) for b in biases])  # f32
    return weights, bias_pack, tuple(widths)


# ----------------------------------------------------------------------------- tiling

def _choose_batch_tiling(B):
    """Batch tile <= MAX_BATCH_TILE, multiple of 8, with an even grid count (>= 2)
    whenever there is more than one sublane-row of work (v7x 2-TC balance)."""
    b_al = _round_up(B, SUBLANE)
    n_tiles = -(-b_al // MAX_BATCH_TILE)
    if b_al > SUBLANE:
        n_tiles = max(n_tiles, 2)
        if n_tiles % 2:
            n_tiles += 1
    tile_b = _round_up(-(-b_al // n_tiles), SUBLANE)
    b_pad = _round_up(b_al, tile_b)
    return tile_b, b_pad, b_pad // tile_b


# ----------------------------------------------------------------------------- forward

@functools.partial(jax.jit, static_argnames=("widths", "num_classes", "out_dtype"))
def deep_classifier_forward(x, weights, bias_pack, *, widths, num_classes,
                            out_dtype=jnp.bfloat16):
    """Fused forward.  x: (B, input_size) f32 or bf16 -> (B, num_classes) f32."""
    B, F = x.shape
    n_out = widths[-1]
    compute_dtype = weights[0].dtype

    tile_b, b_pad, grid_b = _choose_batch_tiling(B)
    if b_pad != B:
        x = jnp.pad(x, ((0, b_pad - B), (0, 0)))

    kernel = _make_kernel(widths, compute_dtype)

    in_specs = [pl.BlockSpec((tile_b, F), lambda i: (i, 0))]                       # streamed x
    in_specs += [pl.BlockSpec(tuple(w.shape), lambda i: (0, 0)) for w in weights]  # resident W
    in_specs += [pl.BlockSpec(tuple(bias_pack.shape), lambda i: (0, 0))]           # resident b
    out_specs = pl.BlockSpec((tile_b, n_out), lambda i: (i, 0))                    # lane-dense bf16

    layer_in = [F] + list(widths[:-1])
    flops = 2 * b_pad * sum(i * o for i, o in zip(layer_in, widths))
    bytes_accessed = (
        b_pad * F * x.dtype.itemsize
        + sum(int(w.size) * w.dtype.itemsize for w in weights)
        + int(bias_pack.size) * 4
        + b_pad * n_out * jnp.dtype(out_dtype).itemsize
    )

    # NOTE: set pltpu.CompilerParams(vmem_limit_bytes=...) only if MAX_BATCH_TILE is
    # pushed past ~4k rows; at 2048 the footprint is well under the scoped default.
    out = pl.pallas_call(
        kernel,
        out_shape=jax.ShapeDtypeStruct((b_pad, n_out), out_dtype),
        grid=(grid_b,),
        in_specs=in_specs,
        out_specs=out_specs,
        compiler_params=pltpu.CompilerParams(dimension_semantics=("parallel",)),
        cost_estimate=pl.CostEstimate(flops=flops, transcendentals=0,
                                      bytes_accessed=bytes_accessed),
    )(x, *weights, bias_pack)

    return out[:B, :num_classes].astype(jnp.float32)


# ----------------------------------------------------------------------------- references

def _reference_unfused(x, hidden, final):
    """Original eval-mode module math in f32 (Linear->ReLU->BN->Dropout ... ->Linear)."""
    h = x
    for (w, b, gamma, beta, mean, var) in hidden:
        h = h @ w + b
        h = jnp.maximum(h, 0.0)
        h = (h - mean) / jnp.sqrt(var + BN_EPS) * gamma + beta
    w_out, b_out = final
    return h @ w_out + b_out


def _reference_folded(x, weights, bias_pack, widths, num_classes,
                      out_dtype=jnp.bfloat16):
    """Mirrors the kernel math exactly (folded/padded params, bf16 activations,
    f32 accumulation, bf16 output)."""
    compute_dtype = weights[0].dtype
    h = x.astype(compute_dtype)
    L = len(weights)
    z = None
    for l in range(L):
        b = bias_pack[l, :widths[l]]
        z = jnp.dot(h, weights[l], preferred_element_type=jnp.float32) + b
        if l < L - 1:
            h = jnp.maximum(z, 0.0).astype(compute_dtype)
        else:
            z = z.astype(out_dtype)
    return z[:, :num_classes].astype(jnp.float32)


# ----------------------------------------------------------------------------- demo

if __name__ == "__main__":
    batch = 8
    input_size = 32
    hidden_sizes = [256, 128, 64]     # module defaults
    num_classes = 2
    compute_dtype = jnp.bfloat16      # bf16 MXU operands / live activations, f32 accum

    key = jax.random.PRNGKey(0)
    key, kx = jax.random.split(key)
    x = jax.random.normal(kx, (batch, input_size), jnp.float32)

    hidden, final = init_raw_params(key, input_size, hidden_sizes, num_classes)
    weights, bias_pack, widths = prepare_params(hidden, final, num_classes, compute_dtype)

    out = deep_classifier_forward(
        x, weights, bias_pack, widths=widths, num_classes=num_classes,
        out_dtype=jnp.bfloat16,
    )
    out = jax.block_until_ready(out)
    assert out.shape == (batch, num_classes)

    # Tight check against a reference that mirrors the kernel math (folded/padded
    # params, same dtypes) -> validates block specs / bias packing / padding.
    ref_folded = _reference_folded(x, weights, bias_pack, widths, num_classes,
                                   out_dtype=jnp.bfloat16)
    assert jnp.allclose(out, ref_folded, atol=1e-2, rtol=1e-2), \
        "Pallas kernel mismatch vs folded reference"

    # Semantics check against the original (unfolded, f32) eval-mode module math;
    # tolerance accounts for bf16 matmul operands / activations / output.
    ref_full = _reference_unfused(x, hidden, final)
    assert jnp.allclose(out, ref_full, atol=5e-2, rtol=5e-2), \
        "Pallas kernel mismatch vs f32 eval-mode reference"

    print("KERNEL_OK")
</pallas_src>

<mosaic_0001>
module attributes {stable_mosaic.version = 11 : i64} {
  func.func @kernel(%arg0: i32, %arg1: memref<8x32xf32, #tpu.memory_space<vmem>>, %arg2: memref<32x256xbf16, #tpu.memory_space<vmem>>, %arg3: memref<256x128xbf16, #tpu.memory_space<vmem>>, %arg4: memref<128x128xbf16, #tpu.memory_space<vmem>>, %arg5: memref<128x128xbf16, #tpu.memory_space<vmem>>, %arg6: memref<4x256xf32, #tpu.memory_space<vmem>>, %arg7: memref<8x128xbf16, #tpu.memory_space<vmem>>) attributes {dimension_semantics = [#tpu.dimension_semantics<parallel>], iteration_bounds = array<i64: 1>, scalar_prefetch = 0 : i64, scratch_operands = 0 : i64, tpu.core_type = #tpu.core_type<tc>, window_params = [{transform_indices = @transform_0, window_bounds = array<i64: 8, 32>}, {pipeline_mode = #tpu.pipeline_mode<synchronous>, transform_indices = @transform_1, window_bounds = array<i64: 32, 256>}, {pipeline_mode = #tpu.pipeline_mode<synchronous>, transform_indices = @transform_2, window_bounds = array<i64: 256, 128>}, {pipeline_mode = #tpu.pipeline_mode<synchronous>, transform_indices = @transform_3, window_bounds = array<i64: 128, 128>}, {pipeline_mode = #tpu.pipeline_mode<synchronous>, transform_indices = @transform_4, window_bounds = array<i64: 128, 128>}, {pipeline_mode = #tpu.pipeline_mode<synchronous>, transform_indices = @transform_5, window_bounds = array<i64: 4, 256>}, {transform_indices = @transform_6, window_bounds = array<i64: 8, 128>}]} {
    %c0 = arith.constant 0 : index
    %c0_0 = arith.constant 0 : index
    %0 = vector.load %arg1[%c0, %c0_0] : memref<8x32xf32, #tpu.memory_space<vmem>>, vector<8x32xf32>
    %1 = arith.truncf %0 : vector<8x32xf32> to vector<8x32xbf16>
    %c0_1 = arith.constant 0 : index
    %c0_2 = arith.constant 0 : index
    %2 = vector.load %arg2[%c0_1, %c0_2] : memref<32x256xbf16, #tpu.memory_space<vmem>>, vector<32x256xbf16>
    %c0_3 = arith.constant 0 : index
    %c0_4 = arith.constant 0 : index
    %3 = vector.load %arg6[%c0_3, %c0_4] : memref<4x256xf32, #tpu.memory_space<vmem>>, vector<1x256xf32>
    %cst = arith.constant dense<0.000000e+00> : vector<8x256xf32>
    %4 = tpu.matmul %1, %2, %cst {dimension_numbers = #tpu.dot_dimension_numbers<[1], [0], [0], [1], [0, 0, 1, 1], [], []>} : vector<8x32xbf16>, vector<32x256xbf16>, vector<8x256xf32> -> vector<8x256xf32>
    %5 = vector.broadcast %3 : vector<1x256xf32> to vector<8x256xf32>
    %6 = arith.addf %4, %5 : vector<8x256xf32>
    %cst_5 = arith.constant 0.000000e+00 : f32
    %7 = vector.broadcast %cst_5 : f32 to vector<8x256xf32>
    %8 = arith.maximumf %6, %7 : vector<8x256xf32>
    %9 = arith.truncf %8 : vector<8x256xf32> to vector<8x256xbf16>
    %c0_6 = arith.constant 0 : index
    %c0_7 = arith.constant 0 : index
    %10 = vector.load %arg3[%c0_6, %c0_7] : memref<256x128xbf16, #tpu.memory_space<vmem>>, vector<256x128xbf16>
    %c1 = arith.constant 1 : index
    %c0_8 = arith.constant 0 : index
    %11 = vector.load %arg6[%c1, %c0_8] : memref<4x256xf32, #tpu.memory_space<vmem>>, vector<1x128xf32>
    %cst_9 = arith.constant dense<0.000000e+00> : vector<8x128xf32>
    %12 = tpu.matmul %9, %10, %cst_9 {dimension_numbers = #tpu.dot_dimension_numbers<[1], [0], [0], [1], [0, 0, 1, 1], [], []>} : vector<8x256xbf16>, vector<256x128xbf16>, vector<8x128xf32> -> vector<8x128xf32>
    %13 = vector.broadcast %11 : vector<1x128xf32> to vector<8x128xf32>
    %14 = arith.addf %12, %13 : vector<8x128xf32>
    %cst_10 = arith.constant 0.000000e+00 : f32
    %15 = vector.broadcast %cst_10 : f32 to vector<8x128xf32>
    %16 = arith.maximumf %14, %15 : vector<8x128xf32>
    %17 = arith.truncf %16 : vector<8x128xf32> to vector<8x128xbf16>
    %c0_11 = arith.constant 0 : index
    %c0_12 = arith.constant 0 : index
    %18 = vector.load %arg4[%c0_11, %c0_12] : memref<128x128xbf16, #tpu.memory_space<vmem>>, vector<128x128xbf16>
    %c2 = arith.constant 2 : index
    %c0_13 = arith.constant 0 : index
    %19 = vector.load %arg6[%c2, %c0_13] : memref<4x256xf32, #tpu.memory_space<vmem>>, vector<1x128xf32>
    %cst_14 = arith.constant dense<0.000000e+00> : vector<8x128xf32>
    %20 = tpu.matmul %17, %18, %cst_14 {dimension_numbers = #tpu.dot_dimension_numbers<[1], [0], [0], [1], [0, 0, 1, 1], [], []>} : vector<8x128xbf16>, vector<128x128xbf16>, vector<8x128xf32> -> vector<8x128xf32>
    %21 = vector.broadcast %19 : vector<1x128xf32> to vector<8x128xf32>
    %22 = arith.addf %20, %21 : vector<8x128xf32>
    %cst_15 = arith.constant 0.000000e+00 : f32
    %23 = vector.broadcast %cst_15 : f32 to vector<8x128xf32>
    %24 = arith.maximumf %22, %23 : vector<8x128xf32>
    %25 = arith.truncf %24 : vector<8x128xf32> to vector<8x128xbf16>
    %c0_16 = arith.constant 0 : index
    %c0_17 = arith.constant 0 : index
    %26 = vector.load %arg5[%c0_16, %c0_17] : memref<128x128xbf16, #tpu.memory_space<vmem>>, vector<128x128xbf16>
    %c3 = arith.constant 3 : index
    %c0_18 = arith.constant 0 : index
    %27 = vector.load %arg6[%c3, %c0_18] : memref<4x256xf32, #tpu.memory_space<vmem>>, vector<1x128xf32>
    %cst_19 = arith.constant dense<0.000000e+00> : vector<8x128xf32>
    %28 = tpu.matmul %25, %26, %cst_19 {dimension_numbers = #tpu.dot_dimension_numbers<[1], [0], [0], [1], [0, 0, 1, 1], [], []>} : vector<8x128xbf16>, vector<128x128xbf16>, vector<8x128xf32> -> vector<8x128xf32>
    %29 = vector.broadcast %27 : vector<1x128xf32> to vector<8x128xf32>
    %30 = arith.addf %28, %29 : vector<8x128xf32>
    %31 = arith.truncf %30 : vector<8x128xf32> to vector<8x128xbf16>
    %c0_20 = arith.constant 0 : index
    %c0_21 = arith.constant 0 : index
    %32 = vector.load %arg7[%c0_20, %c0_21] : memref<8x128xbf16, #tpu.memory_space<vmem>>, vector<8x128xbf16>
    tpu.vector_store %arg7[%c0_20, %c0_21], %31 {strides = array<i32>} : memref<8x128xbf16, #tpu.memory_space<vmem>>, vector<8x128xbf16>,
    return
  }
  func.func @transform_0(%arg0: i32) -> (i32, i32) {
    %c0_i32 = arith.constant 0 : i32
    %c0_i32_0 = arith.constant 0 : i32
    return %arg0, %c0_i32 : i32, i32
  }
  func.func @transform_1(%arg0: i32) -> (i32, i32) {
    %c0_i32 = arith.constant 0 : i32
    %c0_i32_0 = arith.constant 0 : i32
    %c0_i32_1 = arith.constant 0 : i32
    return %c0_i32, %c0_i32_0 : i32, i32
  }
  func.func @transform_2(%arg0: i32) -> (i32, i32) {
    %c0_i32 = arith.constant 0 : i32
    %c0_i32_0 = arith.constant 0 : i32
    %c0_i32_1 = arith.constant 0 : i32
    return %c0_i32, %c0_i32_0 : i32, i32
  }
  func.func @transform_3(%arg0: i32) -> (i32, i32) {
    %c0_i32 = arith.constant 0 : i32
    %c0_i32_0 = arith.constant 0 : i32
    %c0_i32_1 = arith.constant 0 : i32
    return %c0_i32, %c0_i32_0 : i32, i32
  }
  func.func @transform_4(%arg0: i32) -> (i32, i32) {
    %c0_i32 = arith.constant 0 : i32
    %c0_i32_0 = arith.constant 0 : i32
    %c0_i32_1 = arith.constant 0 : i32
    return %c0_i32, %c0_i32_0 : i32, i32
  }
  func.func @transform_5(%arg0: i32) -> (i32, i32) {
    %c0_i32 = arith.constant 0 : i32
    %c0_i32_0 = arith.constant 0 : i32
    %c0_i32_1 = arith.constant 0 : i32
    return %c0_i32, %c0_i32_0 : i32, i32
  }
  func.func @transform_6(%arg0: i32) -> (i32, i32) {
    %c0_i32 = arith.constant 0 : i32
    %c0_i32_0 = arith.constant 0 : i32
    return %arg0, %c0_i32 : i32, i32
  }
}

</mosaic_0001>

<bundles_post_ra>
// kernel: deep_classifier_forward.1
= control target key start
LH: loop header
LB: loop body
LE: loop exit
PB: predicated region body
PF: predicated region fallthrough
CT: control target
= control target key end

     0   :  { %11 = vsyncpa [#allocation3], 0  ;;  %s1016_s0 = inlined_call_operand.hbm [shape: f32[8,32], index: 0, kind: input, shape index: {}]   ;;  %s1017_s1 = inlined_call_operand.hbm [shape: bf16[32,256], index: 1, kind: input, shape index: {}]   ;;  %s1018_s2 = inlined_call_operand.hbm [shape: bf16[256,128], index: 2, kind: input, shape index: {}]   ;;  %s1019_s3 = inlined_call_operand.hbm [shape: bf16[128,128], index: 3, kind: input, shape index: {}]   ;;  %s1020_s4 = inlined_call_operand.hbm [shape: bf16[128,128], index: 4, kind: input, shape index: {}]   ;;  %s1021_s5 = inlined_call_operand.vmem [shape: f32[4,256], index: 5, kind: input, shape index: {}]   ;;  %s1022_s6 = inlined_call_operand.vmem [shape: bf16[8,128], index: 6, kind: output, shape index: {}]  }
   0x1   :  { %12 = vsyncpa [#allocation5], 0 }
   0x2   :  { %13 = vsyncpa [#allocation8], 0  ;;  %s867_s21 = smov [#allocation4]   ;;  %s751_s25 = scalar_lea.hbm %s1017_s1, 512 }
   0x3   :  { %s29_s22 = sshll.u32 %s867_s21, 4  ;;  %p752_p0 = scmp.ne.s32.totalorder %s1017_s1, %s751_s25  ;;  %s30_s22 = int_to_ptr.vmem [resolvable:$true] %s29_s22 }
   0x4   :  { %p755_p1 = scmp.lt.u32.totalorder %s751_s25, %s1017_s1 }
   0x6   :  { %p757_p2 = pnand %p755_p1, %p752_p0 }
   0x8   :  { %760 = shalt.err (!%p757_p2)
}
   0x9   :  { %s761_s30 = scalar_lea.vmem %s30_s22, 512  ;;  %p766_p4 = scmp.lt.s32.totalorder %s30_s22, %s30_s22 }
   0xa   :  { %p762_p3 = scmp.ne.s32.totalorder %s30_s22, %s761_s30  ;;  %p767_p5 = scmp.lt.s32.totalorder %s761_s30, %s761_s30 }
   0xc   :  { %p768_p6 = por %p767_p5, %p766_p4 }
   0xe   :  { %p769_p7 = pnand %p768_p6, %p762_p3 }
  0x10   :  { %772 = shalt.err (!%p769_p7)
}
  0x11   :  { %s868_s7 = smov 128   ;;  %s869_s8 = smov 8  }
  0x12   :  { %35 = dma.hbm_to_vmem [thread:$0]  %s1017_s1, 512, %s30_s22, [#allocation5], %s868_s7, %s868_s7, %s869_s8  }
  0x13   :  { %s870_s11 = smov [#allocation7]   ;;  %s871_s13 = smov [#allocation2]  }
  0x14   :  { %s53_s12 = sshll.u32 %s870_s11, 4  ;;  %s20_s14 = sshll.u32 %s871_s13, 4  ;;  %s54_s12 = int_to_ptr.vmem [resolvable:$true] %s53_s12  ;;  %s21_s14 = int_to_ptr.vmem [resolvable:$true] %s20_s14 }
  0x15   :  { %s773_s17 = scalar_lea.hbm %s1019_s3, 1024 }
  0x16   :  { %p774_p8 = scmp.ne.s32.totalorder %s1019_s3, %s773_s17  ;;  %p777_p9 = scmp.lt.u32.totalorder %s773_s17, %s1019_s3 }
  0x18   :  { %p779_p10 = pnand %p777_p9, %p774_p8 }
  0x1a   :  { %782 = shalt.err (!%p779_p10)
}
  0x1b   :  { %s783_s1 = scalar_lea.vmem %s54_s12, 1024  ;;  %p788_p12 = scmp.lt.s32.totalorder %s54_s12, %s54_s12 }
  0x1c   :  { %p784_p11 = scmp.ne.s32.totalorder %s54_s12, %s783_s1  ;;  %p789_p13 = scmp.lt.s32.totalorder %s783_s1, %s783_s1 }
  0x1e   :  { %p790_p0 = por %p789_p13, %p788_p12 }
  0x20   :  { %p791_p1 = pnand %p790_p0, %p784_p11 }
  0x22   :  { %794 = shalt.err (!%p791_p1)
}
  0x23   :  { %s872_s22 = smov 64   ;;  %s873_s23 = smov 4  }
  0x24   :  { %59 = dma.hbm_to_vmem [thread:$0]  %s1019_s3, 1024, %s54_s12, [#allocation8], %s872_s22, %s872_s22, %s873_s23  }
  0x25   :  { %s795_s28 = scalar_lea.hbm %s1016_s0, 128 }
  0x26   :  { %p796_p2 = scmp.ne.s32.totalorder %s1016_s0, %s795_s28  ;;  %p799_p3 = scmp.lt.u32.totalorder %s795_s28, %s1016_s0 }
  0x28   :  { %p801_p4 = pnand %p799_p3, %p796_p2 }
  0x2a   :  { %804 = shalt.err (!%p801_p4)
}
  0x2b   :  { %s805_s9 = scalar_lea.vmem %s21_s14, 128  ;;  %p810_p6 = scmp.lt.s32.totalorder %s21_s14, %s21_s14 }
  0x2c   :  { %p806_p5 = scmp.ne.s32.totalorder %s21_s14, %s805_s9  ;;  %p811_p7 = scmp.lt.s32.totalorder %s805_s9, %s805_s9 }
  0x2e   :  { %p812_p8 = por %p811_p7, %p810_p6 }
  0x30   :  { %p813_p9 = pnand %p812_p8, %p806_p5 }
  0x32   :  { %816 = shalt.err (!%p813_p9)
}
  0x33   :  { %23 = dma.hbm_to_vmem [thread:$0]  %s1016_s0, 128, %s21_s14, [#allocation3]  }
  0x34   :  { %s874_s11 = smov [#allocation6]   ;;  %s875_s13 = smov [#allocation9]  }
  0x35   :  { %s41_s12 = sshll.u32 %s874_s11, 4  ;;  %s65_s15 = sshll.u32 %s875_s13, 4  ;;  %s42_s12 = int_to_ptr.vmem [resolvable:$true] %s41_s12  ;;  %s66_s15 = int_to_ptr.vmem [resolvable:$true] %s65_s15 }
  0x36   :  { %s817_s18 = scalar_lea.hbm %s1018_s2, 2048 }
  0x37   :  { %p818_p10 = scmp.ne.s32.totalorder %s1018_s2, %s817_s18  ;;  %p821_p11 = scmp.lt.u32.totalorder %s817_s18, %s1018_s2 }
  0x39   :  { %p823_p12 = pnand %p821_p11, %p818_p10 }
  0x3b   :  { %826 = shalt.err (!%p823_p12)
}
  0x3c   :  { %s827_s0 = scalar_lea.vmem %s42_s12, 2048  ;;  %p832_p0 = scmp.lt.s32.totalorder %s42_s12, %s42_s12 }
  0x3d   :  { %p828_p13 = scmp.ne.s32.totalorder %s42_s12, %s827_s0  ;;  %p833_p1 = scmp.lt.s32.totalorder %s827_s0, %s827_s0 }
  0x3f   :  { %p834_p2 = por %p833_p1, %p832_p0 }
  0x41   :  { %p835_p3 = pnand %p834_p2, %p828_p13 }
  0x43   :  { %838 = shalt.err (!%p835_p3)
}
  0x44   :  { %47 = dma.hbm_to_vmem [thread:$0]  %s1018_s2, 2048, %s42_s12, [#allocation5], %s872_s22, %s872_s22, %s873_s23  }
  0x45   :  { %s839_s27 = scalar_lea.hbm %s1020_s4, 1024 }
  0x46   :  { %p840_p4 = scmp.ne.s32.totalorder %s1020_s4, %s839_s27  ;;  %p843_p5 = scmp.lt.u32.totalorder %s839_s27, %s1020_s4 }
  0x48   :  { %p845_p6 = pnand %p843_p5, %p840_p4 }
  0x4a   :  { %848 = shalt.err (!%p845_p6)
}
  0x4b   :  { %s849_s8 = scalar_lea.vmem %s66_s15, 1024  ;;  %p854_p8 = scmp.lt.s32.totalorder %s66_s15, %s66_s15 }
  0x4c   :  { %p850_p7 = scmp.ne.s32.totalorder %s66_s15, %s849_s8  ;;  %p855_p9 = scmp.lt.s32.totalorder %s849_s8, %s849_s8 }
  0x4e   :  { %p856_p10 = por %p855_p9, %p854_p8 }
  0x50   :  { %p857_p11 = pnand %p856_p10, %p850_p7 }
  0x52   :  { %860 = shalt.err (!%p857_p11)
}
  0x53   :  { %71 = dma.hbm_to_vmem [thread:$0]  %s1020_s4, 1024, %s66_s15, [#allocation8], %s872_s22, %s872_s22, %s873_s23  }
  0x54   :  { %861 = dma.done.wait [#allocation3], 128  }
  0x55   :  { %862 = vsyncadd [#allocation3], 4294967168 }
  0x56   :  { %863 = dma.done.wait [#allocation5], 2560  }
  0x57   :  { %864 = vsyncadd [#allocation5], 4294964736 }
  0x58   :  { %865 = dma.done.wait [#allocation8], 2048  }
  0x59   :  { %866 = vsyncadd [#allocation8], 4294965248  ;;  %v876_v0 = vmov 0   ;;  %v713_v1 = vld [vmem:[#allocation4 + $0x4] ss:$8 sps:$4 sm:$0xff]   ;;  %v90_v5 = vld [vmem:[#allocation2] sm:$0xff]  ;;  %v98_v30 = vlaneseq }
  0x5a   :  { %164 = vmatprep.mubr.bf16.mxu0 %v876_v0  ;;  %v715_v2 = vld [vmem:[#allocation4] ss:$8 sps:$4 sm:$0xff]   ;;  %132 = vmatprep.subr.bf16.mxu0 %v713_v1  ;;  %v716_v3 = vld [vmem:[#allocation4 + $0x14] ss:$8 sps:$4 sm:$0xff]   ;;  %v718_v4 = vld [vmem:[#allocation4 + $0x10] ss:$8 sps:$4 sm:$0xff]   ;;  %v91_v9 = vpack.c.bf16 %v90_v5, %v90_v5 }
  0x5b   :  { %133 = vmatpush1.bf16.msra.mxu0 %v715_v2  ;;  %v719_v6 = vld [vmem:[#allocation6 + $0x40] sm:$0xff]   ;;  %v721_v8 = vld [vmem:[#allocation6 + $0x48] sm:$0xff]   ;;  %vm128_vm0 = vcmask 261120   ;;  %v723_v11 = vld [vmem:[#allocation6 + $0x50] sm:$0xff]   ;;  %v877_v24 = vmov 0.0   ;;  %v99_v31 = vshrl.u32 %v98_v30, 7 }
  0x5c   :  { %134 = vmatprep.subr.bf16.mxu0 %v716_v3  ;;  %v720_v7 = vld [vmem:[#allocation6] sm:$0xff]   ;;  %621 = vmatprep.subr.bf16.mxu1 %v719_v6  ;;  %v722_v10 = vld [vmem:[#allocation6 + $0x8] sm:$0xff]   ;;  %v724_v12 = vld [vmem:[#allocation6 + $0x10] sm:$0xff]   ;;  %vm878_vm1 = vmmov 0  }
  0x5d   :  { %622 = vmatpush3.bf16.msra.mxu1 %v720_v7  ;;  %v725_v13 = vld [vmem:[#allocation6 + $0x58] sm:$0xff]   ;;  %v727_v15 = vld [vmem:[#allocation6 + $0x60] sm:$0xff]   ;;  %v729_v17 = vld [vmem:[#allocation6 + $0x68] sm:$0xff]   ;;  %v100_v32 = vsub.s32 0, %v99_v31  ;;  %v104_v34 = vsub.s32 1, %v99_v31 }
  0x5e   :  { %623 = vmatprep.subr.bf16.mxu1 %v721_v8  ;;  %v726_v14 = vld [vmem:[#allocation6 + $0x18] sm:$0xff]   ;;  %v728_v16 = vld [vmem:[#allocation6 + $0x20] sm:$0xff]   ;;  %v730_v18 = vld [vmem:[#allocation6 + $0x28] sm:$0xff]  }
  0x5f   :  { %135 = vmatpush1.bf16.msra.mxu0 %v718_v4  ;;  %v731_v19 = vld [vmem:[#allocation6 + $0x70] sm:$0xff]   ;;  %v733_v21 = vld [vmem:[#allocation6 + $0x78] sm:$0xff]   ;;  %v735_v23 = vld [vmem:[#allocation7] sm:$0xff]  }
  0x60   :  { %v732_v20 = vld [vmem:[#allocation6 + $0x30] sm:$0xff]   ;;  %v734_v22 = vld [vmem:[#allocation6 + $0x38] sm:$0xff]   ;;  %661 = vmatprep.subr.bf16.mxu0 %v877_v24  ;;  %v736_v25 = vld [vmem:[#allocation7 + $0x8] sm:$0xff]  }
  0x61   :  { %624 = vmatpush3.bf16.msra.mxu1 %v722_v10  ;;  %v737_v26 = vld [vmem:[#allocation7 + $0x10] sm:$0xff]   ;;  %v738_v27 = vld [vmem:[#allocation7 + $0x18] sm:$0xff]   ;;  %v739_v28 = vld [vmem:[#allocation7 + $0x20] sm:$0xff]  }
  0x62   :  { %585 = vmatmul.mubr.msk.bf16.vlgmr.msra.gmra.mrb[0].mxu0 %vm128_vm0, %v91_v9  ;;  %625 = vmatprep.subr.bf16.mxu1 %v723_v11  ;;  %v740_v29 = vld [vmem:[#allocation7 + $0x28] sm:$0xff]   ;;  %v96_v33 = vld [vmem:[%s1021_s5] ss:$4 sm:$0x3]  ;;  %v741_v47 = vld [vmem:[#allocation7 + $0x30] sm:$0xff]  }
  0x63   :  { %662 = vmatpush3.bf16.msra.mxu0 %v735_v23  ;;  %v101_v35 = vrot.slane %v96_v33, %v100_v32  ;;  %v105_v36 = vrot.slane %v96_v33, %v104_v34  ;;  %v742_v48 = vld [vmem:[#allocation7 + $0x38] sm:$0xff]   ;;  %677 = vmatprep.mubr.msk.bf16.mxu0 %vm878_vm1, %v877_v24  ;;  %v743_v49 = vld [vmem:[#allocation9] sm:$0xff]   ;;  %v744_v50 = vld [vmem:[#allocation9 + $0x8] sm:$0xff]  }
  0x64   :  { %663 = vmatprep.subr.bf16.mxu0 %v877_v24  ;;  %v745_v51 = vld [vmem:[#allocation9 + $0x10] sm:$0xff]   ;;  %v746_v52 = vld [vmem:[#allocation9 + $0x18] sm:$0xff]   ;;  %v747_v53 = vld [vmem:[#allocation9 + $0x20] sm:$0xff]  }
  0x65   :  { %626 = vmatpush3.bf16.msra.mxu1 %v724_v12  ;;  %v748_v54 = vld [vmem:[#allocation9 + $0x28] sm:$0xff]   ;;  %v586_v56 = vld [vmem:[%s1021_s5 + $0x1] ss:$0 sm:$0xff]  ;;  %v749_v0 = vld [vmem:[#allocation9 + $0x30] sm:$0xff]  }
  0x66   :  { %627 = vmatprep.subr.bf16.mxu1 %v725_v13  ;;  %v750_v1 = vld [vmem:[#allocation9 + $0x38] sm:$0xff]  }
  0x67   :  { %664 = vmatpush3.bf16.msra.mxu0 %v736_v25  ;;  %v603_v2 = vld [vmem:[%s1021_s5 + $0x2] ss:$0 sm:$0xff]  ;;  %v612_v10 = vld [vmem:[%s1021_s5 + $0x3] ss:$0 sm:$0xff] }
  0x68   :  { %665 = vmatprep.subr.bf16.mxu0 %v877_v24 }
  0x69   :  { %628 = vmatpush3.bf16.msra.mxu1 %v726_v14 }
  0x6a   :  { %629 = vmatprep.subr.bf16.mxu1 %v727_v15 }
  0x6b   :  { %666 = vmatpush3.bf16.msra.mxu0 %v737_v26 }
  0x6c   :  { %667 = vmatprep.subr.bf16.mxu0 %v877_v24 }
  0x6d   :  { %630 = vmatpush3.bf16.msra.mxu1 %v728_v16 }
  0x6e   :  { %631 = vmatprep.subr.bf16.mxu1 %v729_v17 }
  0x6f   :  { %668 = vmatpush3.bf16.msra.mxu0 %v738_v27 }
  0x70   :  { %669 = vmatprep.subr.bf16.mxu0 %v877_v24 }
  0x71   :  { %632 = vmatpush3.bf16.msra.mxu1 %v730_v18 }
  0x72   :  { %633 = vmatprep.subr.bf16.mxu1 %v731_v19 }
  0x73   :  { %670 = vmatpush3.bf16.msra.mxu0 %v739_v28 }
  0x74   :  { %671 = vmatprep.subr.bf16.mxu0 %v877_v24 }
  0x75   :  { %634 = vmatpush3.bf16.msra.mxu1 %v732_v20 }
  0x76   :  { %635 = vmatprep.subr.bf16.mxu1 %v733_v21 }
  0x77   :  { %672 = vmatpush3.bf16.msra.mxu0 %v740_v29 }
  0x78   :  { %673 = vmatprep.subr.bf16.mxu0 %v877_v24 }
  0x79   :  { %636 = vmatpush3.bf16.msra.mxu1 %v734_v22 }
  0x7a   :  { %681 = vmatprep.subr.bf16.mxu1 %v877_v24 }
  0x7b   :  { %674 = vmatpush3.bf16.msra.mxu0 %v741_v47 }
  0x7c   :  { %675 = vmatprep.subr.bf16.mxu0 %v877_v24 }
  0x7f   :  { %676 = vmatpush3.bf16.msra.mxu0 %v742_v48 }
 0x135   :  { %v166_v37 = vpop.f32.mrb[0].mxu0 }
 0x136   :  { %v167_v38 = vadd.f32 %v166_v37, %v101_v35  ;;  %v168_v39 = vpop.f32.mrb[1].mxu0 }
 0x137   :  { %v169_v40 = vadd.f32 %v168_v39, %v105_v36  ;;  %v170_v41 = vpop.f32.mrb[2].mxu0 }
 0x138   :  { %v173_v42 = vmax.f32 %v167_v38, 0.0  ;;  %v171_v43 = vpop.f32.mrb[3].mxu0 }
 0x139   :  { %v174_v44 = vmax.f32 %v169_v40, 0.0 }
 0x13a   :  { %v175_v46 = vpack.c.bf16 %v173_v42, %v173_v42 }
 0x13b   :  { %v176_v45 = vpack.c.bf16 %v174_v44, %v174_v44 }
 0x13d   :  { %342 = vmatprep.mubr.bf16.mxu1 %v176_v45 }
 0x13e   :  { %343 = vmatmul.mubr.bf16.vlgmr.msra.gmra.mrb[0].mxu1 %v175_v46 }
 0x13f   :  { %697 = vmatprep.mubr.msk.bf16.mxu1 %vm878_vm1, %v877_v24  ;;  %682 = vmatpush3.bf16.msra.mxu1 %v743_v49 }
 0x140   :  { %683 = vmatprep.subr.bf16.mxu1 %v877_v24 }
 0x143   :  { %684 = vmatpush3.bf16.msra.mxu1 %v744_v50 }
 0x144   :  { %685 = vmatprep.subr.bf16.mxu1 %v877_v24 }
 0x147   :  { %686 = vmatpush3.bf16.msra.mxu1 %v745_v51 }
 0x148   :  { %687 = vmatprep.subr.bf16.mxu1 %v877_v24 }
 0x14b   :  { %688 = vmatpush3.bf16.msra.mxu1 %v746_v52 }
 0x14c   :  { %689 = vmatprep.subr.bf16.mxu1 %v877_v24 }
 0x14f   :  { %690 = vmatpush3.bf16.msra.mxu1 %v747_v53 }
 0x150   :  { %691 = vmatprep.subr.bf16.mxu1 %v877_v24 }
 0x153   :  { %692 = vmatpush3.bf16.msra.mxu1 %v748_v54 }
 0x154   :  { %693 = vmatprep.subr.bf16.mxu1 %v877_v24 }
 0x157   :  { %694 = vmatpush3.bf16.msra.mxu1 %v749_v0 }
 0x158   :  { %695 = vmatprep.subr.bf16.mxu1 %v877_v24 }
 0x15b   :  { %696 = vmatpush3.bf16.msra.mxu1 %v750_v1 }
 0x211   :  { %v637_v55 = vpop.f32.mrb[0].mxu1 }
 0x212   :  { %v638_v57 = vpop.f32.mrb[1].mxu1 }
 0x213   :  { %v639_v58 = vadd.f32 %v638_v57, %v637_v55  ;;  %v640_v59 = vpop.f32.mrb[2].mxu1 }
 0x214   :  { %v641_v60 = vpop.f32.mrb[3].mxu1 }
 0x215   :  { %v345_v61 = vadd.f32 %v639_v58, %v586_v56 }
 0x217   :  { %v350_v62 = vmax.f32 %v345_v61, 0.0 }
 0x219   :  { %v351_v63 = vpack.c.bf16 %v350_v62, %v350_v62 }
 0x21b   :  { %678 = vmatmul.mubr.bf16.vlgmr.msra.gmra.mrb[4].mxu0 %v351_v63 }
 0x2ee   :  { %v455_v3 = vpop.f32.mrb[4].mxu0 }
 0x2ef   :  { %v456_v4 = vadd.f32 %v603_v2, %v455_v3  ;;  %v679_v5 = vpop.f32.mrb[5].mxu0 }
 0x2f0   :  { %v458_v6 = vpop.f32.mrb[6].mxu0 }
 0x2f1   :  { %v461_v7 = vmax.f32 %v456_v4, 0.0  ;;  %v680_v8 = vpop.f32.mrb[7].mxu0 }
 0x2f3   :  { %v462_v9 = vpack.c.bf16 %v461_v7, %v461_v7 }
 0x2f5   :  { %698 = vmatmul.mubr.bf16.vlgmr.msra.gmra.mrb[4].mxu1 %v462_v9 }
 0x3c8   :  { %v566_v11 = vpop.f32.mrb[4].mxu1 }
 0x3c9   :  { %v567_v12 = vadd.f32 %v612_v10, %v566_v11  ;;  %v699_v13 = vpop.f32.mrb[5].mxu1 }
 0x3ca   :  { %v569_v14 = vpop.f32.mrb[6].mxu1 }
 0x3cb   :  { %v572_v15 = vpack.c.bf16 %v567_v12, %v567_v12  ;;  %v700_v16 = vpop.f32.mrb[7].mxu1 }
 0x3cd   :  { %573 = vst [vmem:[%s1022_s6] sm:$0xf] %v572_v15 }
 0x3ce   :  { %578 = vsyncpa [#allocation3], 1 }
 0x3cf   :  { %579 = vsyncpa [#allocation5], 1 }
 0x3d0   :  { %580 = vsyncpa [#allocation8], 1 }

</bundles_post_ra>
